<compile_context>
chip_gen: v7x
topology: tpu7x:2x2x1
jax: 0.10.0
libtpu: 0.0.40
codegen_flags: <defaults>
</compile_context>

<pallas_src>
import functools
import numpy as np

import jax
import jax.numpy as jnp
from jax.experimental import pallas as pl
from jax.experimental.pallas import tpu as pltpu


_BLOCK_BYTES = 4 << 20              # ~4 MiB per buffer
_VMEM_LIMIT = 48 * 1024 * 1024      # explicit scoped-VMEM limit (all gens)
_LANE_CANDS = (8192, 4096, 2048, 1024, 512, 256, 128)


# ----------------------------- helpers --------------------------------------

def _cparams(semantics):
    return pltpu.CompilerParams(dimension_semantics=semantics,
                                vmem_limit_bytes=_VMEM_LIMIT)


def _sublane(itemsize):
    """Sublane quantum per dtype: 8 (32-bit), 16 (16-bit), 32 (8-bit)."""
    return 8 * max(1, 4 // int(itemsize))


def _reduce_dims(shape, dim):
    """(pre, d, post) sizes for reducing `dim` of `shape`."""
    ndim = len(shape)
    dim = dim % ndim
    pre = int(np.prod(shape[:dim], dtype=np.int64)) if dim > 0 else 1
    d = int(shape[dim])
    post = int(np.prod(shape[dim + 1:], dtype=np.int64)) if dim < ndim - 1 else 1
    return dim, pre, d, post


def _row_tile(rows, row_bytes, itemsize, budget=_BLOCK_BYTES):
    """Row tile for (rows, ...) blocks: dtype-aware multiple, ~4 MiB/buffer."""
    sub = _sublane(itemsize)
    tr = budget // max(1, row_bytes)
    tr = max(sub, (tr // sub) * sub)
    return rows if tr >= rows else tr


def _mid_tiles(pre, d, post, itemsize, budget=_BLOCK_BYTES):
    """(pre tile, lane tile) for (PB, D, TP) blocks of ~4 MiB."""
    tp = budget // max(1, d * itemsize)
    tp = max(128, (tp // 128) * 128)
    if tp >= post:
        tp = post                    # full lane dim (allowed even if <128)
    pb = max(1, budget // max(1, d * tp * itemsize))
    pb = min(pb, pre)
    return pb, tp


def _pick_lanes(total):
    """Largest lane width from _LANE_CANDS that exactly divides `total`."""
    for cand in _LANE_CANDS:
        if total % cand == 0:
            return cand
    return None


# ----------------------------- elementwise ops ------------------------------

def _ew_kernel(x_ref, o_ref, *, fn):
    o_ref[...] = fn(x_ref[...]).astype(o_ref.dtype)


def _elementwise(x, fn, *, transcendentals_per_elem=0):
    if x.size == 0:
        return x
    total = int(x.size)
    itemsize = x.dtype.itemsize
    flat = x.reshape(-1)

    lanes = _pick_lanes(total)
    padded = total
    if lanes is None:
        # TODO(synk): rare non-128-divisible sizes still pad in the wrapper
        # (extra HBM round trip); the common divisor path has no pad.
        lanes = 128
        padded = int(pl.cdiv(total, lanes)) * lanes
        flat = jnp.pad(flat, (0, padded - total))

    rows = padded // lanes
    tm = _row_tile(rows, lanes * itemsize, itemsize)
    x2 = flat.reshape(rows, lanes)

    out = pl.pallas_call(
        functools.partial(_ew_kernel, fn=fn),
        out_shape=jax.ShapeDtypeStruct((rows, lanes), x.dtype),
        grid=(pl.cdiv(rows, tm),),
        in_specs=[pl.BlockSpec((tm, lanes), lambda i: (i, 0))],
        out_specs=pl.BlockSpec((tm, lanes), lambda i: (i, 0)),
        compiler_params=_cparams(("parallel",)),
        cost_estimate=pl.CostEstimate(
            flops=total,
            transcendentals=transcendentals_per_elem * total,
            bytes_accessed=2 * total * itemsize),
    )(x2)
    if padded != total:
        out = out.reshape(-1)[:total]
    return out.reshape(x.shape)


# ------------------------- softmax / logsoftmax -----------------------------

def _softmax_kernel(x_ref, o_ref, *, log):
    # Works for both (TR, D) and (PB, D, TP) blocks: reduce axis 1.
    x = x_ref[...].astype(jnp.float32)
    m = jnp.max(x, axis=1, keepdims=True)
    e = jnp.exp(x - m)
    s = jnp.sum(e, axis=1, keepdims=True)
    out = (x - m) - jnp.log(s) if log else e / s
    o_ref[...] = out.astype(o_ref.dtype)


def _softmax(x, dim, log=False):
    dim, pre, d, post = _reduce_dims(x.shape, dim)
    itemsize = x.dtype.itemsize
    total = int(x.size)
    ce = pl.CostEstimate(flops=5 * total, transcendentals=total,
                         bytes_accessed=2 * total * itemsize)

    if post == 1:
        # Reduce along the last (lane) axis: 2-D (rows, D) view.
        # TODO(synk): for D < 128 this under-fills lanes; a sublane-major
        # repack would be faster but is kept out to avoid extra layout ops.
        x2 = x.reshape(pre, d)
        tr = _row_tile(pre, d * itemsize, itemsize)
        out = pl.pallas_call(
            functools.partial(_softmax_kernel, log=log),
            out_shape=jax.ShapeDtypeStruct((pre, d), x.dtype),
            grid=(pl.cdiv(pre, tr),),
            in_specs=[pl.BlockSpec((tr, d), lambda i: (i, 0))],
            out_specs=pl.BlockSpec((tr, d), lambda i: (i, 0)),
            compiler_params=_cparams(("parallel",)),
            cost_estimate=ce,
        )(x2)
        return out.reshape(x.shape)

    # Reduce a middle axis (e.g. NCHW dim=1): (pre, D, post) view, lane-dense
    # `post` tiles, multiple `pre` rows per block to reach ~4 MiB DMAs.
    x3 = x.reshape(pre, d, post)
    pb, tp = _mid_tiles(pre, d, post, itemsize)
    out = pl.pallas_call(
        functools.partial(_softmax_kernel, log=log),
        out_shape=jax.ShapeDtypeStruct((pre, d, post), x.dtype),
        grid=(pl.cdiv(pre, pb), pl.cdiv(post, tp)),
        in_specs=[pl.BlockSpec((pb, d, tp), lambda i, j: (i, 0, j))],
        out_specs=pl.BlockSpec((pb, d, tp), lambda i, j: (i, 0, j)),
        compiler_params=_cparams(("parallel", "parallel")),
        cost_estimate=ce,
    )(x3)
    return out.reshape(x.shape)


# --------------------------------- argmax -----------------------------------

def _nan_as_max(x, is_float):
    # torch.argmax treats NaN as the maximum.
    if not is_float:
        return x
    return jnp.where(jnp.isnan(x), jnp.asarray(jnp.inf, dtype=x.dtype), x)


def _argmax_kernel(x_ref, o_ref, *, is_float):
    # Works for both (TR, D) and (PB, D, TP) blocks: reduce axis 1.
    x = _nan_as_max(x_ref[...], is_float)
    d = x.shape[1]
    m = jnp.max(x, axis=1, keepdims=True)
    idx = jax.lax.broadcasted_iota(jnp.int32, x.shape, 1)
    cand = jnp.where(x == m, idx, jnp.int32(d))       # first occurrence wins
    o_ref[...] = jnp.min(cand, axis=1, keepdims=True)


def _argmax_rows_kernel(x_ref, v_ref, i_ref, *, is_float):
    # Stage 1 of flat argmax: per-row (max value, argmax column) partials.
    x = _nan_as_max(x_ref[...], is_float)             # (TR, L)
    lanes = x.shape[1]
    m = jnp.max(x, axis=1, keepdims=True)
    c = jax.lax.broadcasted_iota(jnp.int32, x.shape, 1)
    cand = jnp.where(x == m, c, jnp.int32(lanes))
    v_ref[...] = m
    i_ref[...] = jnp.min(cand, axis=1, keepdims=True)


def _argmax_flat(x):
    total = int(x.size)
    itemsize = x.dtype.itemsize
    is_float = bool(jnp.issubdtype(x.dtype, jnp.floating))
    flat = x.reshape(-1)

    lanes = _pick_lanes(total)
    if lanes is None:
        # TODO(synk): rare non-128-divisible sizes pad with the dtype minimum
        # (padded positions sit at the largest flat indices so they never win).
        if is_float:
            pad_val = float(jnp.finfo(x.dtype).min)
        elif jnp.issubdtype(x.dtype, jnp.integer):
            pad_val = int(jnp.iinfo(x.dtype).min)
        else:
            pad_val = 0
        lanes = 128
        padded = int(pl.cdiv(total, lanes)) * lanes
        flat = jnp.pad(flat, (0, padded - total), constant_values=pad_val)

    rows = flat.shape[0] // lanes
    x2 = flat.reshape(rows, lanes)
    tr = _row_tile(rows, lanes * itemsize, itemsize)

    vals, cols = pl.pallas_call(
        functools.partial(_argmax_rows_kernel, is_float=is_float),
        out_shape=(jax.ShapeDtypeStruct((rows, 1), x.dtype),
                   jax.ShapeDtypeStruct((rows, 1), jnp.int32)),
        grid=(pl.cdiv(rows, tr),),
        in_specs=[pl.BlockSpec((tr, lanes), lambda i: (i, 0))],
        out_specs=(pl.BlockSpec((tr, 1), lambda i: (i, 0)),
                   pl.BlockSpec((tr, 1), lambda i: (i, 0))),
        compiler_params=_cparams(("parallel",)),
        cost_estimate=pl.CostEstimate(flops=3 * total, transcendentals=0,
                                      bytes_accessed=total * itemsize),
    )(x2)

    # Stage 2: tiny cross-row reduce over total/lanes partials (plain JAX).
    vals = vals.reshape(rows)
    cols = cols.reshape(rows)
    r = jnp.argmax(vals)             # first occurrence -> smallest flat index
    return (r.astype(jnp.int32) * jnp.int32(lanes) + cols[r]).reshape(())


def _argmax(x, dim):
    if dim is None:
        return _argmax_flat(x)

    dim, pre, d, post = _reduce_dims(x.shape, dim)
    out_dims = tuple(s for a, s in enumerate(x.shape) if a != dim)
    itemsize = x.dtype.itemsize
    is_float = bool(jnp.issubdtype(x.dtype, jnp.floating))
    ce = pl.CostEstimate(flops=3 * int(x.size), transcendentals=0,
                         bytes_accessed=int(x.size) * itemsize)

    if post == 1:
        x2 = x.reshape(pre, d)
        tr = _row_tile(pre, d * itemsize, itemsize)
        out = pl.pallas_call(
            functools.partial(_argmax_kernel, is_float=is_float),
            out_shape=jax.ShapeDtypeStruct((pre, 1), jnp.int32),
            grid=(pl.cdiv(pre, tr),),
            in_specs=[pl.BlockSpec((tr, d), lambda i: (i, 0))],
            out_specs=pl.BlockSpec((tr, 1), lambda i: (i, 0)),
            compiler_params=_cparams(("parallel",)),
            cost_estimate=ce,
        )(x2)
        return out.reshape(out_dims)

    x3 = x.reshape(pre, d, post)
    pb, tp = _mid_tiles(pre, d, post, itemsize)
    out = pl.pallas_call(
        functools.partial(_argmax_kernel, is_float=is_float),
        out_shape=jax.ShapeDtypeStruct((pre, 1, post), jnp.int32),
        grid=(pl.cdiv(pre, pb), pl.cdiv(post, tp)),
        in_specs=[pl.BlockSpec((pb, d, tp), lambda i, j: (i, 0, j))],
        out_specs=pl.BlockSpec((pb, 1, tp), lambda i, j: (i, 0, j)),
        compiler_params=_cparams(("parallel", "parallel")),
        cost_estimate=ce,
    )(x3)
    return out.reshape(out_dims)


# --------------------------- Activation dispatcher ---------------------------

def activation(name, x, **params):
    """JAX/Pallas equivalent of Activation(name, **params)(x)."""
    if name is None or name == "identity":
        return x  # no-op: skip the kernel (saves a full HBM round trip)
    elif name == "sigmoid":
        return _elementwise(x, jax.nn.sigmoid, transcendentals_per_elem=1)
    elif name == "tanh":
        return _elementwise(x, jnp.tanh, transcendentals_per_elem=1)
    elif name == "clamp":
        lo = params.get("min", 0)
        hi = params.get("max", 1)
        return _elementwise(x, lambda v: jnp.clip(v, lo, hi))
    elif name == "softmax2d":
        return _softmax(x, dim=1, log=False)
    elif name == "softmax":
        return _softmax(x, dim=params.get("dim", -1), log=False)
    elif name == "logsoftmax":
        return _softmax(x, dim=params.get("dim", -1), log=True)
    elif name == "argmax":
        return _argmax(x, dim=params.get("dim", None))
    elif name == "argmax2d":
        return _argmax(x, dim=1)
    elif callable(name):
        # TODO(synk): arbitrary user callables are executed as plain JAX glue.
        return name(**params)(x)
    else:
        raise ValueError(
            "Activation should be callable/sigmoid/softmax/logsoftmax/tanh/"
            f"argmax/argmax2d/clamp/None; got {name}"
        )


# ----------------------------------- main ------------------------------------

if __name__ == "__main__":
    key = jax.random.PRNGKey(0)
    x = jax.random.normal(key, (2, 4, 16, 16), dtype=jnp.float32)  # NCHW

    checks = []

    y = activation("identity", x)
    checks.append(np.allclose(np.asarray(y), np.asarray(x)))

    y = jax.block_until_ready(activation("sigmoid", x))
    checks.append(np.allclose(np.asarray(y), np.asarray(jax.nn.sigmoid(x)), atol=1e-6))

    y = jax.block_until_ready(activation("tanh", x))
    checks.append(np.allclose(np.asarray(y), np.asarray(jnp.tanh(x)), atol=1e-6))

    y = jax.block_until_ready(activation("clamp", x))  # min=0, max=1 defaults
    checks.append(np.allclose(np.asarray(y), np.asarray(jnp.clip(x, 0, 1)), atol=1e-6))

    y = jax.block_until_ready(activation("softmax2d", x))
    checks.append(np.allclose(np.asarray(y), np.asarray(jax.nn.softmax(x, axis=1)),
                              atol=1e-5, rtol=1e-5))

    y = jax.block_until_ready(activation("softmax", x, dim=-1))  # last-dim path
    checks.append(np.allclose(np.asarray(y), np.asarray(jax.nn.softmax(x, axis=-1)),
                              atol=1e-5, rtol=1e-5))

    y = jax.block_until_ready(activation("logsoftmax", x, dim=1))
    checks.append(np.allclose(np.asarray(y), np.asarray(jax.nn.log_softmax(x, axis=1)),
                              atol=1e-5))

    y = jax.block_until_ready(activation("argmax2d", x))
    checks.append(np.array_equal(np.asarray(y), np.asarray(jnp.argmax(x, axis=1))))

    y = jax.block_until_ready(activation("argmax", x, dim=-1))  # last-dim path
    checks.append(np.array_equal(np.asarray(y), np.asarray(jnp.argmax(x, axis=-1))))

    y = jax.block_until_ready(activation("argmax", x))  # dim=None -> flat scalar
    checks.append(int(np.asarray(y)) == int(np.asarray(jnp.argmax(x))))

    assert all(checks), f"mismatch in activation checks: {checks}"
    print("KERNEL_OK")
</pallas_src>

<mosaic_0001>
module attributes {stable_mosaic.version = 11 : i64} {
  func.func @_ew_kernel(%arg0: i32, %arg1: memref<1x2048xf32, #tpu.memory_space<vmem>>, %arg2: memref<1x2048xf32, #tpu.memory_space<vmem>>) attributes {dimension_semantics = [#tpu.dimension_semantics<parallel>], iteration_bounds = array<i64: 1>, scalar_prefetch = 0 : i64, scratch_operands = 0 : i64, tpu.core_type = #tpu.core_type<tc>, window_params = [{transform_indices = @transform_0, window_bounds = array<i64: 1, 2048>}, {transform_indices = @transform_1, window_bounds = array<i64: 1, 2048>}]} {
    %c0 = arith.constant 0 : index
    %c0_0 = arith.constant 0 : index
    %0 = vector.load %arg1[%c0, %c0_0] : memref<1x2048xf32, #tpu.memory_space<vmem>>, vector<1x2048xf32>
    %1 = arith.negf %0 : vector<1x2048xf32>
    %2 = math.exp %1 : vector<1x2048xf32>
    %cst = arith.constant 1.000000e+00 : f32
    %3 = vector.broadcast %cst : f32 to vector<1x2048xf32>
    %4 = arith.addf %3, %2 : vector<1x2048xf32>
    %5 = arith.divf %3, %4 : vector<1x2048xf32>
    %c0_1 = arith.constant 0 : index
    %c0_2 = arith.constant 0 : index
    %6 = vector.load %arg2[%c0_1, %c0_2] : memref<1x2048xf32, #tpu.memory_space<vmem>>, vector<1x2048xf32>
    tpu.vector_store %arg2[%c0_1, %c0_2], %5 {strides = array<i32>} : memref<1x2048xf32, #tpu.memory_space<vmem>>, vector<1x2048xf32>,
    return
  }
  func.func @transform_0(%arg0: i32) -> (i32, i32) {
    %c0_i32 = arith.constant 0 : i32
    %c0_i32_0 = arith.constant 0 : i32
    return %arg0, %c0_i32 : i32, i32
  }
  func.func @transform_1(%arg0: i32) -> (i32, i32) {
    %c0_i32 = arith.constant 0 : i32
    %c0_i32_0 = arith.constant 0 : i32
    return %arg0, %c0_i32 : i32, i32
  }
}

</mosaic_0001>

<bundles_post_ra>
// kernel: tpu_custom_call.1
= control target key start
LH: loop header
LB: loop body
LE: loop exit
PB: predicated region body
PF: predicated region fallthrough
CT: control target
= control target key end

     0   :  { %6 = vsyncpa [#allocation3], 0  ;;  %s148_s0 = inlined_call_operand.hbm [shape: f32[1,2048], index: 0, kind: input, shape index: {}]   ;;  %s149_s1 = inlined_call_operand.hbm [shape: f32[1,2048], index: 1, kind: output, shape index: {}]  }
   0x1   :  { %7 = vsyncpa [#allocation4], 0  ;;  %s112_s6 = smov [#allocation2]   ;;  %s64_s10 = scalar_lea.hbm %s148_s0, 256 }
   0x2   :  { %s14_s7 = sshll.u32 %s112_s6, 4  ;;  %p65_p0 = scmp.ne.s32.totalorder %s148_s0, %s64_s10  ;;  %s15_s7 = int_to_ptr.vmem [resolvable:$true] %s14_s7 }
   0x3   :  { %p68_p1 = scmp.lt.u32.totalorder %s64_s10, %s148_s0 }
   0x5   :  { %p70_p2 = pnand %p68_p1, %p65_p0 }
   0x7   :  { %73 = shalt.err (!%p70_p2)
}
   0x8   :  { %s74_s15 = scalar_lea.vmem %s15_s7, 256  ;;  %p79_p4 = scmp.lt.s32.totalorder %s15_s7, %s15_s7 }
   0x9   :  { %p75_p3 = scmp.ne.s32.totalorder %s15_s7, %s74_s15  ;;  %p80_p5 = scmp.lt.s32.totalorder %s74_s15, %s74_s15 }
   0xb   :  { %p81_p6 = por %p80_p5, %p79_p4 }
   0xd   :  { %p82_p7 = pnand %p81_p6, %p75_p3 }
   0xf   :  { %85 = shalt.err (!%p82_p7)
}
  0x10   :  { %17 = dma.hbm_to_vmem [thread:$0]  %s148_s0, 256, %s15_s7, [#allocation3]  }
  0x11   :  { %108 = dma.done.wait [#allocation3], 256  }
  0x12   :  { %109 = vsyncadd [#allocation3], 4294967040  ;;  %v21_v0 = vld [vmem:[#allocation2] sm:$0xff]  ;;  %v22_v1 = vld [vmem:[#allocation2 + $0x8] sm:$0xff]  ;;  %s113_s18 = smov [#allocation5]  }
  0x13   :  { %v52_v2 = vmul.f32 -1.442695, %v21_v0  ;;  %v53_v3 = vmul.f32 -1.442695, %v22_v1  ;;  %s43_s19 = sshll.u32 %s113_s18, 4  ;;  %s44_s19 = int_to_ptr.vmem [resolvable:$true] %s43_s19 }
  0x14   :  { %s86_s0 = scalar_lea.vmem %s44_s19, 256  ;;  %p91_p9 = scmp.lt.s32.totalorder %s44_s19, %s44_s19 }
  0x15   :  { %56 = vpow2.f32 %v52_v2  ;;  %p87_p8 = scmp.ne.s32.totalorder %s44_s19, %s86_s0  ;;  %p92_p10 = scmp.lt.s32.totalorder %s86_s0, %s86_s0 }
  0x16   :  { %58 = vpow2.f32 %v53_v3 }
  0x17   :  { %p93_p11 = por %p92_p10, %p91_p9 }
  0x19   :  { %p94_p12 = pnand %p93_p11, %p87_p8 }
  0x1f   :  { %v57_v4 = vpop.eup %56 }
  0x20   :  { %v59_v5 = vpop.eup %58  ;;  %v29_v6 = vadd.f32 1.0, %v57_v4 }
  0x21   :  { %v30_v7 = vadd.f32 1.0, %v59_v5 }
  0x22   :  { %60 = vrcp.f32 %v29_v6 }
  0x23   :  { %62 = vrcp.f32 %v30_v7 }
  0x2c   :  { %v61_v8 = vpop.eup %60 }
  0x2d   :  { %v63_v9 = vpop.eup %62  ;;  %35 = vst [vmem:[#allocation5] sm:$0xff] %v61_v8 }
  0x2e   :  { %36 = vst [vmem:[#allocation5 + $0x8] sm:$0xff] %v63_v9 }
  0x2f   :  { %97 = shalt.err (!%p94_p12)
}
  0x30   :  { %s98_s22 = scalar_lea.hbm %s149_s1, 256 }
  0x31   :  { %p99_p13 = scmp.ne.s32.totalorder %s149_s1, %s98_s22  ;;  %p102_p0 = scmp.lt.u32.totalorder %s98_s22, %s149_s1 }
  0x33   :  { %p104_p1 = pnand %p102_p0, %p99_p13 }
  0x35   :  { %107 = shalt.err (!%p104_p1)
}
  0x36   :  { %46 = dma.vmem_to_hbm [thread:$0]  %s44_s19, 256, %s149_s1, [#allocation4]  }
  0x37   :  { %110 = dma.done.wait [#allocation4], 256  }
  0x38   :  { %111 = vsyncadd [#allocation4], 4294967040 }
  0x39   :  { %50 = vsyncpa [#allocation3], 1 }
  0x3a   :  { %51 = vsyncpa [#allocation4], 1 }

</bundles_post_ra>
